<compile_context>
chip_gen: v7x
topology: tpu7x:2x2x1
jax: 0.10.0
libtpu: 0.0.40
codegen_flags: <defaults>
</compile_context>

<pallas_src>
import functools

import jax
import jax.numpy as jnp
from jax import lax
from jax.experimental import pallas as pl
from jax.experimental.pallas import tpu as pltpu


def _lambda_layer_kernel(x_ref, wqkv_ref, shift_ref, wrel_ref, rexp_ref,
                         wout_ref, oc_ref, o_ref, *, heads, key_depth,
                         intra_depth, v_dim, r_size, pad):
    f32 = jnp.float32
    bf16 = jnp.bfloat16
    h, kd, u, vd = heads, key_depth, intra_depth, v_dim
    cq, ck, cv = h * kd, u * kd, u * vd
    hkv = h * kd * vd
    bt, n, d = x_ref.shape

    x3 = x_ref[...]                                     # [BT, N, D] bf16
    x2b = x3.reshape(bt * n, d)                         # leading-dim collapse only
    x2f = x2b.astype(f32)                               # residual / LN path

    # ---- fused q/k/v 1x1-conv projection (BN scale pre-folded into weights);
    # ---- one MXU pass, 96-wide output, one packed per-channel shift add.
    proj = jnp.dot(x2b, wqkv_ref[...], preferred_element_type=f32)
    proj = proj + shift_ref[...]
    qn = proj[:, 0:cq]                                  # [BT*N, h*kd]  (h-major)
    kn = proj[:, cq:cq + ck]                            # [BT*N, u*kd]  (u-major)
    vn = proj[:, cq + ck:cq + ck + cv]                  # [BT*N, u*vd]  (u-major)

    # ---- softmax over sequence positions, segmented per batch element -------
    kn3 = kn.reshape(bt, n, ck)
    km = jnp.max(kn3, axis=1, keepdims=True)
    ke = jnp.exp(kn3 - km)
    ksm3 = ke / jnp.sum(ke, axis=1, keepdims=True)      # exact divide (parity)
    vn3 = vn.reshape(bt, n, cv)

    # ---- content lambda: one batched cross-product over positions -----------
    # (u^2 over-compute of g is free at these sizes; only diagonal blocks used)
    g = lax.dot_general(ksm3.astype(bf16), vn3.astype(bf16),
                        (((1,), (1,)), ((0,), (0,))),
                        preferred_element_type=f32)     # [BT, u*kd, u*vd]
    lam_c = g[:, 0:kd, 0:vd]
    for uu in range(1, u):
        lam_c = lam_c + g[:, uu * kd:(uu + 1) * kd, uu * vd:(uu + 1) * vd]
    # flatten (k, v) -> lanes and tile h times, with concats only (no
    # minor-dim reshape):  lamc_wide3[b, 0, hh*kd*vd + k*vd + v] = lam_c[b,k,v]
    lamc_flat3 = jnp.concatenate([lam_c[:, i:i + 1, :] for i in range(kd)],
                                 axis=2)                # [BT, 1, kd*vd]
    lamc_wide3 = jnp.concatenate([lamc_flat3] * h, axis=2)   # [BT, 1, hkv]

    # ---- positional lambdas: zero-padded shifted copies of v contracted with
    # ---- the (h-tiled) rel-pos weight -> already at full hkv lane width.
    if pad > 0:
        zpad = jnp.zeros((bt, pad, cv), f32)
        vp = jnp.concatenate([zpad, vn3, zpad], axis=1)       # [BT, N+2p, u*vd]
    else:
        vp = vn3
    vstack = jnp.concatenate([vp[:, r:r + n, :] for r in range(r_size)],
                             axis=2)                          # [BT, N, R*u*vd]
    lamp = jnp.dot(vstack.reshape(bt * n, r_size * cv).astype(bf16),
                   wrel_ref[...], preferred_element_type=f32)  # [BT*N, hkv]

    # ---- q head-expansion (0/1 matrix -> MXU, which has slack), one
    # ---- full-width VPU multiply against (content + positional) lambdas,
    # ---- then a single fused (key-sum x output-dense) matmul.
    q_rep = jnp.dot(qn.astype(bf16), rexp_ref[...],
                    preferred_element_type=f32)               # [BT*N, hkv]
    lam_tot = lamp.reshape(bt, n, hkv) + lamc_wide3           # broadcast over N
    prod = q_rep.reshape(bt, n, hkv) * lam_tot
    yd = jnp.dot(prod.reshape(bt * n, hkv).astype(bf16), wout_ref[...],
                 preferred_element_type=f32)                  # [BT*N, D]

    # ---- BertSelfOutput: +bias, +residual, LayerNorm (dropout = identity) ---
    oc = oc_ref[...]                                          # [3, D]
    res = yd + oc[0:1, :] + x2f
    mu = jnp.mean(res, axis=-1, keepdims=True)
    var = jnp.mean((res - mu) ** 2, axis=-1, keepdims=True)
    out = (res - mu) * lax.rsqrt(var + 1e-12) * oc[1:2, :] + oc[2:3, :]

    o_ref[...] = out.reshape(bt, n, d).astype(o_ref.dtype)


def _auto_batch_tile(B, N):
    """Largest divisor of B such that (a) >=2 grid steps remain when B >= 2
    (v7x has 2 TensorCores fed via dimension_semantics=('parallel',)), and
    (b) rows-per-step stays <= 2048 (~6 KiB f32 of 256-lane intermediates per
    row => ~12 MiB, far under the 32 MiB scoped / 64 MiB v7x VMEM)."""
    best = 1
    for d in range(1, B + 1):
        if B % d != 0:
            continue
        if B >= 2 and B // d < 2:
            continue
        if d * N > 2048:
            continue
        best = d
    return best


def lambda_layer_forward(x, params, *, heads, key_depth, intra_depth,
                         local_context_size, batch_tile=None):
    """LambdaLayer forward (eval mode)."""
    B, N, D = x.shape
    h, kd, u = heads, key_depth, intra_depth
    vd = D // heads
    R = local_context_size
    pad = R // 2
    bn_eps = 1e-5
    cq, ck, cv = h * kd, u * kd, u * vd
    hkv = h * kd * vd
    f32, bf16 = jnp.float32, jnp.bfloat16

    if batch_tile is None:
        batch_tile = _auto_batch_tile(B, N)
    assert B % batch_tile == 0
    BT = batch_tile

    # ---- fold eval BatchNorm scale into the projection weights (f32 fold,
    # ---- single bf16 cast); pack the remaining shifts into one bias row.
    q_scale = params["q_gamma"] / jnp.sqrt(params["q_var"] + bn_eps)
    q_shift = params["q_beta"] - params["q_mean"] * q_scale
    v_scale = params["v_gamma"] / jnp.sqrt(params["v_var"] + bn_eps)
    v_shift = params["v_beta"] - params["v_mean"] * v_scale

    # k/v output channels permuted to u-major so the kernel sees contiguous
    # per-u column blocks (q is already h-major).
    wq_t = params["wq"].T * q_scale[None, :]                           # [D, h*kd]
    wk_t = (params["wk"].reshape(kd, u, D).transpose(1, 0, 2)
            .reshape(ck, D).T)                                         # [D, u*kd]
    wv_t = (params["wv"].reshape(vd, u, D).transpose(1, 0, 2)
            .reshape(cv, D).T)                                         # [D, u*vd]
    v_scale_p = v_scale.reshape(vd, u).T.reshape(cv)
    v_shift_p = v_shift.reshape(vd, u).T.reshape(cv)
    wv_t = wv_t * v_scale_p[None, :]
    w_qkv = jnp.concatenate([wq_t, wk_t, wv_t], axis=1).astype(bf16)   # [D, 96]
    qkv_shift = jnp.concatenate(
        [q_shift, jnp.zeros((ck,), f32), v_shift_p]).reshape(1, cq + ck + cv)

    # rel-pos conv -> one stacked matmul weight, columns tiled h times so the
    # positional lambdas leave the MXU at full h*kd*vd lane width:
    #   w_rel[(r,u,v'), (k,v)] = E[k,u,r] * (v' == v)
    E = params["rel_pos"][:, :, 0, :]                                  # [kd, u, R]
    eye_v = jnp.eye(vd, dtype=f32)
    w_rel = jnp.einsum("kur,vw->ruvkw", E, eye_v).reshape(R * cv, kd * vd)
    w_rel_wide = jnp.tile(w_rel, (1, h)).astype(bf16)                  # [R*cv, hkv]

    # 0/1 head-expansion (hoisted):  q_rep[m, hk*vd + v] = qn[m, hk]
    rows = jnp.arange(cq)
    cols = rows[:, None] * vd + jnp.arange(vd)[None, :]
    r_exp = (jnp.zeros((cq, hkv), f32).at[rows[:, None], cols].set(1.0)
             .astype(bf16))                                            # [cq, hkv]

    # key-sum matrix fused into the output dense:  prod @ (ssum @ Wo^T)
    ci = jnp.arange(hkv)
    ssum = (jnp.zeros((hkv, D), f32)
            .at[ci, (ci // (kd * vd)) * vd + ci % vd].set(1.0))
    w_out = (ssum @ params["wo"].T).astype(bf16)                       # [hkv, D]

    out_consts = jnp.stack([params["bo"], params["ln_gamma"],
                            params["ln_beta"]]).astype(f32)            # [3, D]

    kernel = functools.partial(
        _lambda_layer_kernel, heads=h, key_depth=kd, intra_depth=u,
        v_dim=vd, r_size=R, pad=pad)

    m_rows = B * N
    flops = (2 * m_rows * D * (cq + ck + cv)      # fused q/k/v projection
             + 2 * m_rows * ck * cv               # content cross-product
             + 2 * m_rows * cq * hkv              # q head expansion
             + 2 * m_rows * (R * cv) * hkv        # positional lambdas
             + 2 * m_rows * hkv * D)              # fused key-sum + output dense
    transcendentals = m_rows * ck                 # softmax exps
    bytes_accessed = (2 * B * N * D + 4 * B * N * D
                      + 2 * (w_qkv.size + w_rel_wide.size + r_exp.size
                             + w_out.size)
                      + 4 * (qkv_shift.size + out_consts.size))

    out = pl.pallas_call(
        kernel,
        out_shape=jax.ShapeDtypeStruct((B, N, D), jnp.float32),
        grid=(B // BT,),
        in_specs=[
            pl.BlockSpec((BT, N, D), lambda b: (b, 0, 0)),         # x (bf16)
            pl.BlockSpec((D, cq + ck + cv), lambda b: (0, 0)),     # fused Wqkv
            pl.BlockSpec((1, cq + ck + cv), lambda b: (0, 0)),     # packed BN shift
            pl.BlockSpec((R * cv, hkv), lambda b: (0, 0)),         # rel-pos (h-tiled)
            pl.BlockSpec((cq, hkv), lambda b: (0, 0)),             # head expansion
            pl.BlockSpec((hkv, D), lambda b: (0, 0)),              # key-sum @ Wo^T
            pl.BlockSpec((3, D), lambda b: (0, 0)),                # bo / ln_g / ln_b
        ],
        out_specs=pl.BlockSpec((BT, N, D), lambda b: (b, 0, 0)),
        compiler_params=pltpu.CompilerParams(
            dimension_semantics=("parallel",),
            vmem_limit_bytes=32 * 1024 * 1024),
        cost_estimate=pl.CostEstimate(flops=int(flops),
                                      transcendentals=int(transcendentals),
                                      bytes_accessed=int(bytes_accessed)),
    )(x.astype(bf16), w_qkv, qkv_shift, w_rel_wide, r_exp, w_out, out_consts)
    return out


def reference_forward(x, params, *, heads, key_depth, intra_depth,
                      local_context_size):
    """Pure-JAX (f32) mirror of the PyTorch forward (eval mode) for validation."""
    B, N, D = x.shape
    v_dim = D // heads
    pad = local_context_size // 2
    R = local_context_size
    xT = jnp.transpose(x, (0, 2, 1))                        # [B, D, N]
    q = jnp.einsum("od,bdn->bon", params["wq"], xT)
    k = jnp.einsum("od,bdn->bon", params["wk"], xT)
    v = jnp.einsum("od,bdn->bon", params["wv"], xT)

    def bn(t, mean, var, gamma, beta):
        return ((t - mean[None, :, None]) / jnp.sqrt(var[None, :, None] + 1e-5)
                * gamma[None, :, None] + beta[None, :, None])

    q = bn(q, params["q_mean"], params["q_var"], params["q_gamma"], params["q_beta"])
    v = bn(v, params["v_mean"], params["v_var"], params["v_gamma"], params["v_beta"])
    q4 = q.reshape(B, heads, key_depth, N)
    k4 = k.reshape(B, key_depth, intra_depth, N).transpose(0, 2, 1, 3)
    v4 = v.reshape(B, v_dim, intra_depth, N).transpose(0, 2, 1, 3)
    k4 = jax.nn.softmax(k4, axis=-1)
    lam_c = jnp.einsum("bukn,buvn->bkv", k4, v4)
    yc = jnp.einsum("bhkn,bkv->bnhv", q4, lam_c)
    v4p = jnp.pad(v4, ((0, 0), (0, 0), (0, 0), (pad, pad)))
    E = params["rel_pos"][:, :, 0, :]
    lamp = jnp.zeros((B, key_depth, v_dim, N), x.dtype)
    for r in range(R):
        lamp = lamp + jnp.einsum("ku,buvn->bkvn", E[:, :, r], v4p[..., r:r + N])
    yp = jnp.einsum("bhkn,bkvn->bnhv", q4, lamp)
    y = (yc + yp).reshape(B, N, heads * v_dim)
    yd = jnp.einsum("bnd,ed->bne", y, params["wo"]) + params["bo"]
    res = yd + x
    mu = jnp.mean(res, axis=-1, keepdims=True)
    var = jnp.mean((res - mu) ** 2, axis=-1, keepdims=True)
    return (res - mu) / jnp.sqrt(var + 1e-12) * params["ln_gamma"] + params["ln_beta"]


if __name__ == "__main__":
    # config: hidden=32, heads=4 (=> v_dim=8), key_depth=8, intra_depth=4,
    # local_context_size=3, batch=2, seq=16
    B, N, D = 2, 16, 32
    heads, key_depth, intra_depth, lcs = 4, 8, 4, 3
    v_dim = D // heads

    key = jax.random.PRNGKey(0)
    ks = jax.random.split(key, 16)
    f32 = jnp.float32
    params = {
        "wq": 0.2 * jax.random.normal(ks[0], (heads * key_depth, D), f32),
        "wk": 0.2 * jax.random.normal(ks[1], (key_depth * intra_depth, D), f32),
        "wv": 0.2 * jax.random.normal(ks[2], (v_dim * intra_depth, D), f32),
        "q_gamma": 1.0 + 0.1 * jax.random.normal(ks[3], (heads * key_depth,), f32),
        "q_beta": 0.1 * jax.random.normal(ks[4], (heads * key_depth,), f32),
        "q_mean": 0.1 * jax.random.normal(ks[5], (heads * key_depth,), f32),
        "q_var": 1.0 + 0.1 * jnp.abs(jax.random.normal(ks[6], (heads * key_depth,), f32)),
        "v_gamma": 1.0 + 0.1 * jax.random.normal(ks[7], (v_dim * intra_depth,), f32),
        "v_beta": 0.1 * jax.random.normal(ks[8], (v_dim * intra_depth,), f32),
        "v_mean": 0.1 * jax.random.normal(ks[9], (v_dim * intra_depth,), f32),
        "v_var": 1.0 + 0.1 * jnp.abs(jax.random.normal(ks[10], (v_dim * intra_depth,), f32)),
        "rel_pos": jax.random.normal(ks[11], (key_depth, intra_depth, 1, lcs), f32),
        "wo": 0.2 * jax.random.normal(ks[12], (D, D), f32),
        "bo": 0.1 * jax.random.normal(ks[13], (D,), f32),
        "ln_gamma": 1.0 + 0.1 * jax.random.normal(ks[14], (D,), f32),
        "ln_beta": 0.1 * jax.random.normal(ks[15], (D,), f32),
    }
    x = jax.random.normal(jax.random.fold_in(key, 99), (B, N, D), f32)

    out = lambda_layer_forward(x, params, heads=heads, key_depth=key_depth,
                               intra_depth=intra_depth, local_context_size=lcs)
    out = jax.block_until_ready(out)

    ref = reference_forward(x, params, heads=heads, key_depth=key_depth,
                            intra_depth=intra_depth, local_context_size=lcs)
    assert out.shape == (B, N, D)
    # bf16 streamed activations + bf16 MXU operand chain => loosened tolerance
    # vs the pure-f32 reference.
    max_err = float(jnp.max(jnp.abs(out - ref)))
    if max_err > 7.5e-2:
        raise AssertionError(f"kernel/reference mismatch: max abs err = {max_err}")
    print("KERNEL_OK")
</pallas_src>

<mosaic_0001>
module attributes {stable_mosaic.version = 11 : i64} {
  func.func @_lambda_layer_kernel(%arg0: i32, %arg1: memref<1x16x32xbf16, #tpu.memory_space<vmem>>, %arg2: memref<32x96xbf16, #tpu.memory_space<vmem>>, %arg3: memref<1x96xf32, #tpu.memory_space<vmem>>, %arg4: memref<96x256xbf16, #tpu.memory_space<vmem>>, %arg5: memref<32x256xbf16, #tpu.memory_space<vmem>>, %arg6: memref<256x32xbf16, #tpu.memory_space<vmem>>, %arg7: memref<3x32xf32, #tpu.memory_space<vmem>>, %arg8: memref<1x16x32xf32, #tpu.memory_space<vmem>>) attributes {dimension_semantics = [#tpu.dimension_semantics<parallel>], iteration_bounds = array<i64: 2>, scalar_prefetch = 0 : i64, scratch_operands = 0 : i64, tpu.core_type = #tpu.core_type<tc>, window_params = [{transform_indices = @transform_0, window_bounds = array<i64: 1, 16, 32>}, {pipeline_mode = #tpu.pipeline_mode<synchronous>, transform_indices = @transform_1, window_bounds = array<i64: 32, 96>}, {pipeline_mode = #tpu.pipeline_mode<synchronous>, transform_indices = @transform_2, window_bounds = array<i64: 1, 96>}, {pipeline_mode = #tpu.pipeline_mode<synchronous>, transform_indices = @transform_3, window_bounds = array<i64: 96, 256>}, {pipeline_mode = #tpu.pipeline_mode<synchronous>, transform_indices = @transform_4, window_bounds = array<i64: 32, 256>}, {pipeline_mode = #tpu.pipeline_mode<synchronous>, transform_indices = @transform_5, window_bounds = array<i64: 256, 32>}, {pipeline_mode = #tpu.pipeline_mode<synchronous>, transform_indices = @transform_6, window_bounds = array<i64: 3, 32>}, {transform_indices = @transform_7, window_bounds = array<i64: 1, 16, 32>}]} {
    %c0 = arith.constant 0 : index
    %c0_0 = arith.constant 0 : index
    %c0_1 = arith.constant 0 : index
    %0 = vector.load %arg1[%c0, %c0_0, %c0_1] : memref<1x16x32xbf16, #tpu.memory_space<vmem>>, vector<1x16x32xbf16>
    %1 = vector.shape_cast %0 : vector<1x16x32xbf16> to vector<16x32xbf16>
    %2 = arith.extf %1 : vector<16x32xbf16> to vector<16x32xf32>
    %c0_2 = arith.constant 0 : index
    %c0_3 = arith.constant 0 : index
    %3 = vector.load %arg2[%c0_2, %c0_3] : memref<32x96xbf16, #tpu.memory_space<vmem>>, vector<32x96xbf16>
    %cst = arith.constant dense<0.000000e+00> : vector<16x96xf32>
    %4 = tpu.matmul %1, %3, %cst {dimension_numbers = #tpu.dot_dimension_numbers<[1], [0], [0], [1], [0, 0, 1, 1], [], []>} : vector<16x32xbf16>, vector<32x96xbf16>, vector<16x96xf32> -> vector<16x96xf32>
    %c0_4 = arith.constant 0 : index
    %c0_5 = arith.constant 0 : index
    %5 = vector.load %arg3[%c0_4, %c0_5] : memref<1x96xf32, #tpu.memory_space<vmem>>, vector<1x96xf32>
    %6 = vector.broadcast %5 : vector<1x96xf32> to vector<16x96xf32>
    %7 = arith.addf %4, %6 : vector<16x96xf32>
    %8 = vector.extract_strided_slice %7 {offsets = [0, 0], sizes = [16, 32], strides = [1, 1]} : vector<16x96xf32> to vector<16x32xf32>
    %9 = vector.extract_strided_slice %7 {offsets = [0, 32], sizes = [16, 32], strides = [1, 1]} : vector<16x96xf32> to vector<16x32xf32>
    %10 = vector.extract_strided_slice %7 {offsets = [0, 64], sizes = [16, 32], strides = [1, 1]} : vector<16x96xf32> to vector<16x32xf32>
    %11 = vector.shape_cast %9 : vector<16x32xf32> to vector<1x16x32xf32>
    %cst_6 = arith.constant dense<0xFF800000> : vector<1x32xf32>
    %12 = vector.multi_reduction <maximumf>, %11, %cst_6 [1] : vector<1x16x32xf32> to vector<1x32xf32>
    %13 = vector.shape_cast %12 : vector<1x32xf32> to vector<1x1x32xf32>
    %14 = vector.broadcast %13 : vector<1x1x32xf32> to vector<1x16x32xf32>
    %15 = arith.subf %11, %14 : vector<1x16x32xf32>
    %16 = math.exp %15 : vector<1x16x32xf32>
    %cst_7 = arith.constant dense<0.000000e+00> : vector<1x32xf32>
    %17 = vector.multi_reduction <add>, %16, %cst_7 [1] : vector<1x16x32xf32> to vector<1x32xf32>
    %18 = vector.shape_cast %17 : vector<1x32xf32> to vector<1x1x32xf32>
    %19 = vector.broadcast %18 : vector<1x1x32xf32> to vector<1x16x32xf32>
    %20 = arith.divf %16, %19 : vector<1x16x32xf32>
    %21 = vector.shape_cast %10 : vector<16x32xf32> to vector<1x16x32xf32>
    %22 = arith.truncf %20 : vector<1x16x32xf32> to vector<1x16x32xbf16>
    %23 = arith.truncf %21 : vector<1x16x32xf32> to vector<1x16x32xbf16>
    %cst_8 = arith.constant dense<0.000000e+00> : vector<1x32x32xf32>
    %24 = tpu.matmul %22, %23, %cst_8 {dimension_numbers = #tpu.dot_dimension_numbers<[1], [1], [2], [2], [0, 0, 0, 2, 1, 2], [0], [0]>} : vector<1x16x32xbf16>, vector<1x16x32xbf16>, vector<1x32x32xf32> -> vector<1x32x32xf32>
    %25 = vector.extract_strided_slice %24 {offsets = [0, 0, 0], sizes = [1, 8, 8], strides = [1, 1, 1]} : vector<1x32x32xf32> to vector<1x8x8xf32>
    %26 = vector.extract_strided_slice %24 {offsets = [0, 8, 8], sizes = [1, 8, 8], strides = [1, 1, 1]} : vector<1x32x32xf32> to vector<1x8x8xf32>
    %27 = arith.addf %25, %26 : vector<1x8x8xf32>
    %28 = vector.extract_strided_slice %24 {offsets = [0, 16, 16], sizes = [1, 8, 8], strides = [1, 1, 1]} : vector<1x32x32xf32> to vector<1x8x8xf32>
    %29 = arith.addf %27, %28 : vector<1x8x8xf32>
    %30 = vector.extract_strided_slice %24 {offsets = [0, 24, 24], sizes = [1, 8, 8], strides = [1, 1, 1]} : vector<1x32x32xf32> to vector<1x8x8xf32>
    %31 = arith.addf %29, %30 : vector<1x8x8xf32>
    %32 = vector.extract_strided_slice %31 {offsets = [0, 0, 0], sizes = [1, 1, 8], strides = [1, 1, 1]} : vector<1x8x8xf32> to vector<1x1x8xf32>
    %33 = vector.extract_strided_slice %31 {offsets = [0, 1, 0], sizes = [1, 1, 8], strides = [1, 1, 1]} : vector<1x8x8xf32> to vector<1x1x8xf32>
    %34 = vector.extract_strided_slice %31 {offsets = [0, 2, 0], sizes = [1, 1, 8], strides = [1, 1, 1]} : vector<1x8x8xf32> to vector<1x1x8xf32>
    %35 = vector.extract_strided_slice %31 {offsets = [0, 3, 0], sizes = [1, 1, 8], strides = [1, 1, 1]} : vector<1x8x8xf32> to vector<1x1x8xf32>
    %36 = vector.extract_strided_slice %31 {offsets = [0, 4, 0], sizes = [1, 1, 8], strides = [1, 1, 1]} : vector<1x8x8xf32> to vector<1x1x8xf32>
    %37 = vector.extract_strided_slice %31 {offsets = [0, 5, 0], sizes = [1, 1, 8], strides = [1, 1, 1]} : vector<1x8x8xf32> to vector<1x1x8xf32>
    %38 = vector.extract_strided_slice %31 {offsets = [0, 6, 0], sizes = [1, 1, 8], strides = [1, 1, 1]} : vector<1x8x8xf32> to vector<1x1x8xf32>
    %39 = vector.extract_strided_slice %31 {offsets = [0, 7, 0], sizes = [1, 1, 8], strides = [1, 1, 1]} : vector<1x8x8xf32> to vector<1x1x8xf32>
    %40 = tpu.concatenate %32, %33, %34, %35, %36, %37, %38, %39 in 2 : vector<1x1x8xf32>, vector<1x1x8xf32>, vector<1x1x8xf32>, vector<1x1x8xf32>, vector<1x1x8xf32>, vector<1x1x8xf32>, vector<1x1x8xf32>, vector<1x1x8xf32> -> vector<1x1x64xf32>
    %41 = tpu.concatenate %40, %40, %40, %40 in 2 : vector<1x1x64xf32>, vector<1x1x64xf32>, vector<1x1x64xf32>, vector<1x1x64xf32> -> vector<1x1x256xf32>
    %cst_9 = arith.constant 0.000000e+00 : f32
    %42 = vector.broadcast %cst_9 : f32 to vector<1x1x32xf32>
    %43 = tpu.concatenate %42, %21, %42 in 1 : vector<1x1x32xf32>, vector<1x16x32xf32>, vector<1x1x32xf32> -> vector<1x18x32xf32>
    %44 = vector.extract_strided_slice %43 {offsets = [0, 0, 0], sizes = [1, 16, 32], strides = [1, 1, 1]} : vector<1x18x32xf32> to vector<1x16x32xf32>
    %45 = vector.extract_strided_slice %43 {offsets = [0, 1, 0], sizes = [1, 16, 32], strides = [1, 1, 1]} : vector<1x18x32xf32> to vector<1x16x32xf32>
    %46 = vector.extract_strided_slice %43 {offsets = [0, 2, 0], sizes = [1, 16, 32], strides = [1, 1, 1]} : vector<1x18x32xf32> to vector<1x16x32xf32>
    %47 = tpu.concatenate %44, %45, %46 in 2 : vector<1x16x32xf32>, vector<1x16x32xf32>, vector<1x16x32xf32> -> vector<1x16x96xf32>
    %48 = vector.shape_cast %47 : vector<1x16x96xf32> to vector<16x96xf32>
    %49 = arith.truncf %48 : vector<16x96xf32> to vector<16x96xbf16>
    %c0_10 = arith.constant 0 : index
    %c0_11 = arith.constant 0 : index
    %50 = vector.load %arg4[%c0_10, %c0_11] : memref<96x256xbf16, #tpu.memory_space<vmem>>, vector<96x256xbf16>
    %cst_12 = arith.constant dense<0.000000e+00> : vector<16x256xf32>
    %51 = tpu.matmul %49, %50, %cst_12 {dimension_numbers = #tpu.dot_dimension_numbers<[1], [0], [0], [1], [0, 0, 1, 1], [], []>} : vector<16x96xbf16>, vector<96x256xbf16>, vector<16x256xf32> -> vector<16x256xf32>
    %52 = arith.truncf %8 : vector<16x32xf32> to vector<16x32xbf16>
    %c0_13 = arith.constant 0 : index
    %c0_14 = arith.constant 0 : index
    %53 = vector.load %arg5[%c0_13, %c0_14] : memref<32x256xbf16, #tpu.memory_space<vmem>>, vector<32x256xbf16>
    %cst_15 = arith.constant dense<0.000000e+00> : vector<16x256xf32>
    %54 = tpu.matmul %52, %53, %cst_15 {dimension_numbers = #tpu.dot_dimension_numbers<[1], [0], [0], [1], [0, 0, 1, 1], [], []>} : vector<16x32xbf16>, vector<32x256xbf16>, vector<16x256xf32> -> vector<16x256xf32>
    %55 = vector.shape_cast %51 : vector<16x256xf32> to vector<1x16x256xf32>
    %56 = vector.broadcast %41 : vector<1x1x256xf32> to vector<1x16x256xf32>
    %57 = arith.addf %55, %56 : vector<1x16x256xf32>
    %58 = vector.shape_cast %54 : vector<16x256xf32> to vector<1x16x256xf32>
    %59 = arith.mulf %58, %57 : vector<1x16x256xf32>
    %60 = vector.shape_cast %59 : vector<1x16x256xf32> to vector<16x256xf32>
    %61 = arith.truncf %60 : vector<16x256xf32> to vector<16x256xbf16>
    %c0_16 = arith.constant 0 : index
    %c0_17 = arith.constant 0 : index
    %62 = vector.load %arg6[%c0_16, %c0_17] : memref<256x32xbf16, #tpu.memory_space<vmem>>, vector<256x32xbf16>
    %cst_18 = arith.constant dense<0.000000e+00> : vector<16x32xf32>
    %63 = tpu.matmul %61, %62, %cst_18 {dimension_numbers = #tpu.dot_dimension_numbers<[1], [0], [0], [1], [0, 0, 1, 1], [], []>} : vector<16x256xbf16>, vector<256x32xbf16>, vector<16x32xf32> -> vector<16x32xf32>
    %c0_19 = arith.constant 0 : index
    %c0_20 = arith.constant 0 : index
    %64 = vector.load %arg7[%c0_19, %c0_20] : memref<3x32xf32, #tpu.memory_space<vmem>>, vector<3x32xf32>
    %65 = vector.extract_strided_slice %64 {offsets = [0, 0], sizes = [1, 32], strides = [1, 1]} : vector<3x32xf32> to vector<1x32xf32>
    %66 = vector.broadcast %65 : vector<1x32xf32> to vector<16x32xf32>
    %67 = arith.addf %63, %66 : vector<16x32xf32>
    %68 = arith.addf %67, %2 : vector<16x32xf32>
    %cst_21 = arith.constant dense<0.000000e+00> : vector<16xf32>
    %69 = vector.multi_reduction <add>, %68, %cst_21 [1] : vector<16x32xf32> to vector<16xf32>
    %70 = vector.shape_cast %69 : vector<16xf32> to vector<16x1xf32>
    %cst_22 = arith.constant 3.200000e+01 : f32
    %71 = vector.broadcast %cst_22 : f32 to vector<16x1xf32>
    %72 = arith.divf %70, %71 : vector<16x1xf32>
    %73 = vector.broadcast %72 : vector<16x1xf32> to vector<16x32xf32>
    %74 = arith.subf %68, %73 : vector<16x32xf32>
    %75 = arith.mulf %74, %74 : vector<16x32xf32>
    %cst_23 = arith.constant dense<0.000000e+00> : vector<16xf32>
    %76 = vector.multi_reduction <add>, %75, %cst_23 [1] : vector<16x32xf32> to vector<16xf32>
    %77 = vector.shape_cast %76 : vector<16xf32> to vector<16x1xf32>
    %cst_24 = arith.constant 3.200000e+01 : f32
    %78 = vector.broadcast %cst_24 : f32 to vector<16x1xf32>
    %79 = arith.divf %77, %78 : vector<16x1xf32>
    %80 = vector.broadcast %72 : vector<16x1xf32> to vector<16x32xf32>
    %81 = arith.subf %68, %80 : vector<16x32xf32>
    %cst_25 = arith.constant 9.99999996E-13 : f32
    %82 = vector.broadcast %cst_25 : f32 to vector<16x1xf32>
    %83 = arith.addf %79, %82 : vector<16x1xf32>
    %84 = math.rsqrt %83 : vector<16x1xf32>
    %85 = vector.broadcast %84 : vector<16x1xf32> to vector<16x32xf32>
    %86 = arith.mulf %81, %85 : vector<16x32xf32>
    %87 = vector.extract_strided_slice %64 {offsets = [1, 0], sizes = [1, 32], strides = [1, 1]} : vector<3x32xf32> to vector<1x32xf32>
    %88 = vector.broadcast %87 : vector<1x32xf32> to vector<16x32xf32>
    %89 = arith.mulf %86, %88 : vector<16x32xf32>
    %90 = vector.extract_strided_slice %64 {offsets = [2, 0], sizes = [1, 32], strides = [1, 1]} : vector<3x32xf32> to vector<1x32xf32>
    %91 = vector.broadcast %90 : vector<1x32xf32> to vector<16x32xf32>
    %92 = arith.addf %89, %91 : vector<16x32xf32>
    %93 = vector.shape_cast %92 : vector<16x32xf32> to vector<1x16x32xf32>
    %c0_26 = arith.constant 0 : index
    %c0_27 = arith.constant 0 : index
    %c0_28 = arith.constant 0 : index
    %94 = vector.load %arg8[%c0_26, %c0_27, %c0_28] : memref<1x16x32xf32, #tpu.memory_space<vmem>>, vector<1x16x32xf32>
    tpu.vector_store %arg8[%c0_26, %c0_27, %c0_28], %93 {strides = array<i32>} : memref<1x16x32xf32, #tpu.memory_space<vmem>>, vector<1x16x32xf32>,
    return
  }
  func.func @transform_0(%arg0: i32) -> (i32, i32, i32) {
    %c0_i32 = arith.constant 0 : i32
    %c0_i32_0 = arith.constant 0 : i32
    %c0_i32_1 = arith.constant 0 : i32
    return %arg0, %c0_i32, %c0_i32_0 : i32, i32, i32
  }
  func.func @transform_1(%arg0: i32) -> (i32, i32) {
    %c0_i32 = arith.constant 0 : i32
    %c0_i32_0 = arith.constant 0 : i32
    %c0_i32_1 = arith.constant 0 : i32
    return %c0_i32, %c0_i32_0 : i32, i32
  }
  func.func @transform_2(%arg0: i32) -> (i32, i32) {
    %c0_i32 = arith.constant 0 : i32
    %c0_i32_0 = arith.constant 0 : i32
    %c0_i32_1 = arith.constant 0 : i32
    return %c0_i32, %c0_i32_0 : i32, i32
  }
  func.func @transform_3(%arg0: i32) -> (i32, i32) {
    %c0_i32 = arith.constant 0 : i32
    %c0_i32_0 = arith.constant 0 : i32
    %c0_i32_1 = arith.constant 0 : i32
    return %c0_i32, %c0_i32_0 : i32, i32
  }
  func.func @transform_4(%arg0: i32) -> (i32, i32) {
    %c0_i32 = arith.constant 0 : i32
    %c0_i32_0 = arith.constant 0 : i32
    %c0_i32_1 = arith.constant 0 : i32
    return %c0_i32, %c0_i32_0 : i32, i32
  }
  func.func @transform_5(%arg0: i32) -> (i32, i32) {
    %c0_i32 = arith.constant 0 : i32
    %c0_i32_0 = arith.constant 0 : i32
    %c0_i32_1 = arith.constant 0 : i32
    return %c0_i32, %c0_i32_0 : i32, i32
  }
  func.func @transform_6(%arg0: i32) -> (i32, i32) {
    %c0_i32 = arith.constant 0 : i32
    %c0_i32_0 = arith.constant 0 : i32
    %c0_i32_1 = arith.constant 0 : i32
    return %c0_i32, %c0_i32_0 : i32, i32
  }
  func.func @transform_7(%arg0: i32) -> (i32, i32, i32) {
    %c0_i32 = arith.constant 0 : i32
    %c0_i32_0 = arith.constant 0 : i32
    %c0_i32_1 = arith.constant 0 : i32
    return %arg0, %c0_i32, %c0_i32_0 : i32, i32, i32
  }
}

</mosaic_0001>

<bundles_post_ra>
// kernel: tpu_custom_call.1
= control target key start
LH: loop header
LB: loop body
LE: loop exit
PB: predicated region body
PF: predicated region fallthrough
CT: control target
= control target key end

     0   :  { %12 = vsyncpa [#allocation3], 0  ;;  %s1676_s0 = inlined_call_operand.vmem [shape: bf16[2,16,32], index: 0, kind: input, shape index: {}]   ;;  %s1677_s1 = inlined_call_operand.vmem [shape: bf16[32,96], index: 1, kind: input, shape index: {}]   ;;  %s1678_s2 = inlined_call_operand.vmem [shape: f32[1,96], index: 2, kind: input, shape index: {}]   ;;  %s1679_s3 = inlined_call_operand.vmem [shape: bf16[96,256], index: 3, kind: input, shape index: {}]   ;;  %s1680_s4 = inlined_call_operand.vmem [shape: bf16[32,256], index: 4, kind: input, shape index: {}]   ;;  %s1681_s5 = inlined_call_operand.vmem [shape: bf16[256,32], index: 5, kind: input, shape index: {}]   ;;  %s1682_s6 = inlined_call_operand.vmem [shape: f32[3,32], index: 6, kind: input, shape index: {}]   ;;  %s1683_s7 = inlined_call_operand.hbm [shape: f32[2,16,32], index: 7, kind: output, shape index: {}]  }
   0x1   :  { %14 = vsyncpa [#allocation3 + $0x1], 0  ;;  %s1413_s24 = smov 0   ;;  %s1415_s25 = smov 0  }
   0x2   :  { %s1417_s26 = smov 0   ;;  %s1419_s27 = smov 0  }
   0x3 LB: > { %s1434_s28 = sadd.s32 4294967295, %s1354_s27   ;;  %s1071_s29 = sadd.s32 4294967294, %s1354_s27   ;;  %s1354_s27 = sphi %s1419_s27, %s1689_s27   ;;  %s1350_s26 = sphi %s1417_s26, %s1688_s26   ;;  %s1346_s25 = sphi %s1415_s25, %s1687_s25   ;;  %s1342_s24 = sphi %s1413_s24, %s1686_s24  }
   0x4   : > { %s1438_s30 = sadd.s32 1, %s1354_s27   ;;  %s179_s8 = sadd.s32 1, %s1350_s26 }
   0x5   : > { %s176_s9 = ssub.s32 %s1354_s27, %s1438_s30  ;;  %p189_p0 = scmp.ne.s32.totalorder %s1350_s26, %s1346_s25 }
   0x6   : > { %p177_p1 = scmp.eq.s32.totalorder %s176_s9, 0  ;;  %p190_p2 = scmp.eq.s32.totalorder %s1434_s28, 1 }
   0x7   : > { %p195_p3 = scmp.ne.s32.totalorder %s1346_s25, %s1342_s24  ;;  %p196_p4 = scmp.eq.s32.totalorder %s1071_s29, 1 }
   0x8   : > { %s1449_s10 = scalar_select %p177_p1, %s1350_s26, %s179_s8  }
   0x9   : > { %p1451_p5 = por %p190_p2, %p189_p0  ;;  %p1455_p6 = por %p196_p4, %p195_p3 }
   0xa   : > { %p1074_p7 = scmp.ge.s32.totalorder %s1354_s27, 1  ;;  %p240_p8 = scmp.lt.s32.totalorder %s1354_s27, 3 }
   0xc   : > { %p241_p9 = pnand %p1074_p7, %p240_p8 }
   0xd   : > { %v1238_v0 = vld [vmem:[%s1677_s1] sm:$0xff] (!%p241_p9)   ;;  %v1356_v1 = vmov (!%p241_p9), 0.0   ;;  %v1239_v2 = vld [vmem:[%s1677_s1 + $0x8] sm:$0xff] (!%p241_p9)   ;;  %vm1357_vm0 = vmmov (!%p241_p9), 0   ;;  %p272_p10 = scmp.lt.s32.totalorder (!%p241_p9), %s1434_s28, 1  ;;  %vm310_vm1 = vcmask (!%p241_p9), 261120  }
   0xe   : > { %244 = sbr.rel (%p241_p9) target bundleno = 1665 (0x681), region = 48  ;;  %1154 = vmatprep.subr.bf16.mxu1 (!%p241_p9), %v1356_v1  ;;  %1158 = vmatprep.mubr.msk.bf16.mxu1 (!%p241_p9), %vm1357_vm0, %v1356_v1  ;;  %v1241_v3 = vld [vmem:[%s1680_s4 + $0x4] ss:$8 sps:$4 sm:$0xff] (!%p241_p9)   ;;  %v1243_v5 = vld [vmem:[%s1680_s4] ss:$8 sps:$4 sm:$0xff] (!%p241_p9)   ;;  %v1358_v8 = vmov (!%p241_p9), 0  }
   0xf   : > { %1155 = vmatpush3.bf16.msra.mxu1 (!%p241_p9), %v1238_v0  ;;  %721 = vmatprep.subr.bf16.mxu0 (!%p241_p9), %v1241_v3  ;;  %v1244_v6 = vld [vmem:[%s1680_s4 + $0x14] ss:$8 sps:$4 sm:$0xff] (!%p241_p9)   ;;  %v1246_v7 = vld [vmem:[%s1680_s4 + $0x10] ss:$8 sps:$4 sm:$0xff] (!%p241_p9)   ;;  %v1078_v9 = vld [vmem:[%s1678_s2] ss:$0 sm:$0xff] (!%p241_p9) }
  0x10   : > { %1156 = vmatprep.subr.bf16.mxu1 (!%p241_p9), %v1356_v1  ;;  %722 = vmatpush1.bf16.msra.mxu0 (!%p241_p9), %v1243_v5  ;;  %vm355_vm2 = vcmask (!%p241_p9), 523520   ;;  %vm529_vm3 = vcmask (!%p241_p9), 1040384   ;;  %s1359_s18 = smov (!%p241_p9), 96   ;;  %v1249_v51 = vld [vmem:[%s1679_s3 + $0x4] ss:$8 sps:$4 sm:$0xff] (!%p241_p9)   ;;  %vm409_vm4 = vcmask (!%p241_p9), 130048  }
  0x11   : > { %723 = vmatprep.subr.bf16.mxu0 (!%p241_p9), %v1244_v6  ;;  %753 = vmatprep.mubr.bf16.mxu0 (!%p241_p9), %v1358_v8  ;;  %v1247_v57 = vld [vmem:[%s1679_s3] ss:$8 sps:$4 sm:$0xff] (!%p241_p9)   ;;  %v1252_v58 = vld [vmem:[%s1679_s3 + $0x14] ss:$8 sps:$4 sm:$0xff] (!%p241_p9)   ;;  %v1250_v60 = vld [vmem:[%s1679_s3 + $0x10] ss:$8 sps:$4 sm:$0xff] (!%p241_p9)  }
  0x12   : > { %v1255_v61 = vld [vmem:[%s1679_s3 + $0x24] ss:$8 sps:$4 sm:$0xff] (!%p241_p9)   ;;  %v1253_v62 = vld [vmem:[%s1679_s3 + $0x20] ss:$8 sps:$4 sm:$0xff] (!%p241_p9)   ;;  %v1258_v63 = vld [vmem:[%s1679_s3 + $0x34] ss:$8 sps:$4 sm:$0xff] (!%p241_p9)  }
  0x13   : > { %1157 = vmatpush3.bf16.msra.mxu1 (!%p241_p9), %v1239_v2  ;;  %v1256_v0 = vld [vmem:[%s1679_s3 + $0x30] ss:$8 sps:$4 sm:$0xff] (!%p241_p9)   ;;  %v1261_v1 = vld [vmem:[%s1679_s3 + $0x44] ss:$8 sps:$4 sm:$0xff] (!%p241_p9)   ;;  %v1259_v2 = vld [vmem:[%s1679_s3 + $0x40] ss:$8 sps:$4 sm:$0xff] (!%p241_p9)  }
  0x14   : > { %724 = vmatpush1.bf16.msra.mxu0 (!%p241_p9), %v1246_v7  ;;  %v1264_v3 = vld [vmem:[%s1679_s3 + $0x54] ss:$8 sps:$4 sm:$0xff] (!%p241_p9)   ;;  %vm558_vm5 = vcmask (!%p241_p9), 1045504   ;;  %vm546_vm6 = vcmask (!%p241_p9), 1046528   ;;  %s1361_s17 = smov (!%p241_p9), 32   ;;  %vm525_vm7 = vcmask (!%p241_p9), 523264  }
  0x15   : > { %s273_s19 = scalar_select %p272_p10, %s1434_s28, 1  ;;  %vm647_vm8 = vcmask 785408   ;;  %vm509_vm9 = vcmask 64512   ;;  %vm512_vm10 = vcmask 195584   ;;  %vm515_vm11 = vcmask 326656  }
  0x16   : > { %s1364_s21 = smov 104   ;;  %s1365_s22 = smov 16   ;;  %vm517_vm12 = vcmask 392192   ;;  %vm519_vm13 = vcmask 457728  }
  0x17   : > { %s1124_s20 = sshll.u32 %s273_s19, 3  ;;  %s1360_s19 = smov 64  }
  0x18   : > { %s276_s23 = scalar_lea.vmem %s1676_s0, %s1124_s20  ;;  %s1363_s20 = smov 120  }
  0x19   : > { %v1475_v4 = vld [vmem:[%s276_s23] sm:$0xff]   ;;  %s1366_s23 = smov 8   ;;  %s1368_s9 = smov 48  }
  0x1a   : > { %1159 = vmatmul.mubr.msk.bf16.vlgmr.msra.gmra.mrb[0].mxu1 %vm310_vm1, %v1475_v4  ;;  %s1369_s13 = smov 40   ;;  %s1125_s14 = sshll.u32 %s1434_s28, 8 }
  0xed   : > { %v348_v10 = vpop.f32.mrb[0].mxu1 }
  0xee   : > { %v349_v11 = vadd.f32 %v1078_v9, %v348_v10  ;;  %v1160_v12 = vpop.f32.mrb[1].mxu1 }
  0xef   : > { %v351_v13 = vpop.f32.mrb[2].mxu1 }
  0xf0   : > { %v352_v14 = vadd.f32 %v1078_v9, %v351_v13  ;;  %v1161_v15 = vpop.f32.mrb[3].mxu1  ;;  %v356_v16 = vsel %vm355_vm2, %v349_v11, -inf  ;;  %v530_v19 = vrot.slane %v349_v11, 7  ;;  %v1262_v9 = vld [vmem:[%s1679_s3 + $0x50] ss:$8 sps:$4 sm:$0xff]  }
  0xf2   : > { %v357_v17 = vsel %vm355_vm2, %v352_v14, -inf  ;;  %v384_v18 = vpack.c.bf16 %v352_v14, %v349_v11  ;;  %v531_v20 = vrot.slane %v352_v14, 7 }
  0xf3   : > { %v358_v21 = vmax.f32 %v356_v16, %v357_v17 }
  0xf4   : > { %1102 = vmatmul.mubr.msk.bf16.vlgmr.msra.gmra.mrb[0].mxu0 %vm310_vm1, %v384_v18  ;;  %v532_v22 = vsel %vm529_vm3, %v530_v19, %v531_v20  ;;  %v1223_v23 = vpack.i.bf16 %v531_v20, %v530_v19 }
  0xf5   : > { %v359_v24 = vrot.slane %v358_v21, 4 }
  0xf7   : > { %v360_v25 = vmax.f32 %v358_v21, %v359_v24 }
  0xf9   : > { %v361_v26 = vrot.slane %v360_v25, 2 }
  0xfb   : > { %v362_v27 = vmax.f32 %v360_v25, %v361_v26 }
  0xfd   : > { %v363_v28 = vrot.slane %v362_v27, 1 }
  0xff   : > { %v364_v29 = vmax.f32 %v362_v27, %v363_v28 }
 0x101   : > { %v365_v30 = vsub.f32 %v349_v11, %v364_v29  ;;  %v366_v31 = vsub.f32 %v352_v14, %v364_v29 }
 0x103   : > { %v367_v32 = vmul.f32 1.442695, %v365_v30  ;;  %v369_v33 = vmul.f32 1.442695, %v366_v31 }
 0x105   : > { %1282 = vpow2.f32 %v367_v32 }
 0x106   : > { %1284 = vpow2.f32 %v369_v33 }
 0x10f   : > { %v1283_v34 = vpop.eup %1282 }
 0x110   : > { %v1285_v35 = vpop.eup %1284  ;;  %v371_v36 = vsel %vm355_vm2, %v1283_v34, 0.0 }
 0x111   : > { %v372_v37 = vsel %vm355_vm2, %v1285_v35, 0.0 }
 0x112   : > { %v373_v38 = vadd.f32 %v372_v37, %v371_v36 }
 0x114   : > { %v374_v39 = vrot.slane %v373_v38, 4 }
 0x116   : > { %v375_v40 = vadd.f32 %v374_v39, %v373_v38 }
 0x118   : > { %v376_v41 = vrot.slane %v375_v40, 2 }
 0x11a   : > { %v377_v42 = vadd.f32 %v376_v41, %v375_v40 }
 0x11c   : > { %v378_v43 = vrot.slane %v377_v42, 1 }
 0x11e   : > { %v379_v44 = vadd.f32 %v378_v43, %v377_v42 }
 0x120   : > { %1286 = vrcp.f32 %v379_v44 }
 0x12a   : > { %v1287_v45 = vpop.eup %1286 }
 0x12b   : > { %v381_v46 = vmul.f32 %v1287_v45, %v1283_v34  ;;  %v382_v47 = vmul.f32 %v1287_v45, %v1285_v35 }
 0x12d   : > { %v383_v48 = vpack.c.bf16 %v382_v47, %v381_v46  ;;  %v1265_v47 = vld [vmem:[%s1681_s5 + $0x40] sm:$0xff]  }
 0x12e   : > { %1132 = vmatprep.subr.bf16.mxu0 %v1265_v47 }
 0x12f   : > { %386 = vrot.lane.b32.xlu0 %v383_v48, %s1359_s18  ;;  %s1362_s18 = smov 112   ;;  %v1266_v48 = vld [vmem:[%s1681_s5] sm:$0xff]  }
 0x130   : > { %1133 = vmatpush3.bf16.msra.mxu0 %v1266_v48 }
 0x133   : > { %406 = vrot.lane.b32.xlu0 %v384_v18, %s1360_s19 }
 0x137   : > { %535 = vrot.lane.b32.xlu0 %v532_v22, %s1360_s19 }
 0x1a1   : > { %v387_v49 = vpop.permute.xlu0 %386 }
 0x1a2   : > { %389 = vxpose.xlu1.c.b16.start.end [1/1] (short) (narrow) %v387_v49, 32  ;;  %v1267_v49 = vld [vmem:[%s1681_s5 + $0x48] sm:$0xff]  }
 0x1a3   : > { %1134 = vmatprep.subr.bf16.mxu0 %v1267_v49 }
 0x1a5   : > { %v407_v50 = vpop.permute.xlu0 %406 }
 0x1a6   : > { %1162 = vmatprep.subr.bf16.mxu1 %v407_v50 }
 0x1a7   : > { %1163 = vmatpush3.bf16.msra.mxu1 %v407_v50 }
 0x1a8   : > { %651 = vmatprep.subr.bf16.mxu1 %v1249_v51 }
 0x1a9   : > { %v536_v5 = vpop.permute.xlu0 %535 }
 0x1aa   : > { %1224 = vrot.lane.b32.xlu1 %v1223_v23, %s1360_s19  ;;  %v548_v10 = vrot.slane %v536_v5, 1  ;;  %v560_v11 = vrot.slane %v536_v5, 2 }
 0x1c7   : > { %v1504_v52 = vpop.f32.mrb[0].mxu0 }
 0x1c8   : > { %v1506_v53 = vpop.f32.mrb[1].mxu0 }
 0x1c9   : > { %v1508_v54 = vpop.f32.mrb[2].mxu0 }
 0x1ca   : > { %v1510_v55 = vpop.f32.mrb[3].mxu0 }
 0x208   : > { %v397_v56 = vpop.trf.xlu1 }
 0x209   : > { %1164 = vmatprep.mubr.msk.bf16.mxu1 %vm409_vm4, %v397_v56  ;;  %v1268_v56 = vld [vmem:[%s1681_s5 + $0x8] sm:$0xff]  }
 0x20a   : > { %1135 = vmatpush3.bf16.msra.mxu0 %v1268_v56 }
 0x20c   : > { %v398_v59 = vpop.trf.xlu1 }
 0x20d   : > { %1165 = vmatmul.mubr.msk.bf16.vlgmr.msra.gmra.mrb[4].mxu1 %vm409_vm4, %v398_v59 }
 0x20e   : > { %652 = vmatpush1.bf16.msra.mxu1 %v1247_v57  ;;  %683 = vmatprep.mubr.bf16.mxu1 %v1358_v8  ;;  %v1269_v57 = vld [vmem:[%s1681_s5 + $0x50] sm:$0xff]  }
 0x20f   : > { %653 = vmatprep.subr.bf16.mxu1 %v1252_v58  ;;  %1136 = vmatprep.subr.bf16.mxu0 %v1269_v57 }
 0x212   : > { %654 = vmatpush1.bf16.msra.mxu1 %v1250_v60  ;;  %v1270_v60 = vld [vmem:[%s1681_s5 + $0x10] sm:$0xff]  }
 0x213   : > { %655 = vmatprep.subr.bf16.mxu1 %v1255_v61  ;;  %v1271_v61 = vld [vmem:[%s1681_s5 + $0x58] sm:$0xff]   ;;  %1137 = vmatpush3.bf16.msra.mxu0 %v1270_v60 }
 0x214   : > { %1138 = vmatprep.subr.bf16.mxu0 %v1271_v61 }
 0x216   : > { %656 = vmatpush1.bf16.msra.mxu1 %v1253_v62 }
 0x217   : > { %657 = vmatprep.subr.bf16.mxu1 %v1258_v63  ;;  %v1272_v63 = vld [vmem:[%s1681_s5 + $0x18] sm:$0xff]  }
 0x218   : > { %1139 = vmatpush3.bf16.msra.mxu0 %v1272_v63 }
 0x21a   : > { %658 = vmatpush1.bf16.msra.mxu1 %v1256_v0  ;;  %v1273_v0 = vld [vmem:[%s1681_s5 + $0x60] sm:$0xff]  }
 0x21b   : > { %659 = vmatprep.subr.bf16.mxu1 %v1261_v1  ;;  %v1274_v1 = vld [vmem:[%s1681_s5 + $0x20] sm:$0xff]   ;;  %1140 = vmatprep.subr.bf16.mxu0 %v1273_v0 }
 0x21c   : > { %v1225_v6 = vpop.permute.xlu1 %1224  ;;  %1141 = vmatpush3.bf16.msra.mxu0 %v1274_v1 }
 0x21d   : > { %v1227_v7 = vunpack.i.h.bf16 %v1225_v6  ;;  %v1226_v8 = vunpack.i.l.bf16 %v1225_v6  ;;  %v1276_v6 = vld [vmem:[%s1681_s5 + $0x28] sm:$0xff]  }
 0x21e   : > { %660 = vmatpush1.bf16.msra.mxu1 %v1259_v2  ;;  %v1275_v2 = vld [vmem:[%s1681_s5 + $0x68] sm:$0xff]  }
 0x21f   : > { %v543_v12 = vsel %vm529_vm3, %v1227_v7, 0.0  ;;  %v542_v13 = vsel %vm529_vm3, 0.0, %v1226_v8  ;;  %661 = vmatprep.subr.bf16.mxu1 %v1264_v3  ;;  %1142 = vmatprep.subr.bf16.mxu0 %v1275_v2 }
 0x220   : > { %v550_v14 = vrot.slane %v543_v12, 1  ;;  %v562_v15 = vrot.slane %v543_v12, 2  ;;  %v547_v16 = vrot.slane %v542_v13, 1  ;;  %v559_v17 = vrot.slane %v542_v13, 2  ;;  %1143 = vmatpush3.bf16.msra.mxu0 %v1276_v6  ;;  %v1277_v12 = vld [vmem:[%s1681_s5 + $0x70] sm:$0xff]  }
 0x221   : > { %1144 = vmatprep.subr.bf16.mxu0 %v1277_v12 }
 0x222   : > { %v561_v18 = vsel %vm558_vm5, %v559_v17, %v560_v11  ;;  %v563_v19 = vsel %vm558_vm5, %v560_v11, %v562_v15  ;;  %v549_v20 = vsel %vm546_vm6, %v547_v16, %v548_v10  ;;  %v551_v21 = vsel %vm546_vm6, %v548_v10, %v550_v14  ;;  %662 = vmatpush1.bf16.msra.mxu1 %v1262_v9  ;;  %v1279_v17 = vld [vmem:[%s1681_s5 + $0x78] sm:$0xff]  }
 0x223   : > { %v1233_v22 = vpack.i.bf16 %v563_v19, %v561_v18  ;;  %v1228_v23 = vpack.i.bf16 %v551_v21, %v549_v20  ;;  %v1280_v19 = vld [vmem:[%s1681_s5 + $0x38] sm:$0xff]  }
 0x225   : > { %1234 = vrot.lane.b32.xlu1 %v1233_v22, %s1360_s19  ;;  %1229 = vrot.lane.b32.xlu0 %v1228_v23, %s1361_s17 }
 0x297   : > { %v1235_v24 = vpop.permute.xlu1 %1234  ;;  %v1230_v25 = vpop.permute.xlu0 %1229 }
 0x298   : > { %v1237_v26 = vunpack.i.h.bf16 %v1235_v24  ;;  %v1236_v27 = vunpack.i.l.bf16 %v1235_v24  ;;  %v1232_v28 = vunpack.i.h.bf16 %v1230_v25  ;;  %v1231_v29 = vunpack.i.l.bf16 %v1230_v25 }
 0x29a   : > { %v571_v30 = vsel %vm310_vm1, %v536_v5, %v1232_v28  ;;  %v570_v31 = vsel %vm310_vm1, %v542_v13, %v1231_v29  ;;  %v1278_v13 = vld [vmem:[%s1681_s5 + $0x30] sm:$0xff]  }
 0x29b   : > { %v573_v32 = vsel %vm525_vm7, %v571_v30, %v1237_v26  ;;  %v572_v33 = vsel %vm525_vm7, %v570_v31, %v1236_v27  ;;  %1145 = vmatpush3.bf16.msra.mxu0 %v1278_v13  ;;  %v764_v27 = vlaneseq }
 0x29c   : > { %v574_v34 = vpack.c.bf16 %v573_v32, %v572_v33  ;;  %1146 = vmatprep.subr.bf16.mxu0 %v1279_v17 }
 0x29d   : > { %v765_v28 = vshrl.u32 %v764_v27, 7 }
 0x29e   : > { %1097 = vmatmul.mubr.msk.bf16.vlgmr.msra.gmra.mrb[8].mxu1 %vm647_vm8, %v574_v34 }
 0x29f   : > { %1147 = vmatpush3.bf16.msra.mxu0 %v1280_v19  ;;  %v766_v29 = vsub.s32 0, %v765_v28  ;;  %v989_v12 = vsub.s32 2, %v765_v28 }
 0x2e0   : > { %v1166_v35 = vpop.f32.mrb[4].mxu1 }
 0x2e1   : > { %471 = vrot.lane.b32.xlu1 %v1166_v35, %s1362_s18  ;;  %v450_v36 = vpop.f32.mrb[5].mxu1  ;;  %s1370_s18 = smov 56  }
 0x2e2   : > { %v1167_v37 = vpop.f32.mrb[6].mxu1 }
 0x2e3   : > { %v453_v38 = vpop.f32.mrb[7].mxu1 }
 0x2e4   : > { %466 = vrot.lane.b32.xlu0 %v453_v38, %s1363_s20  ;;  %s1367_s20 = smov 24  }
 0x2e8   : > { %476 = vrot.lane.b32.xlu0 %v1167_v37, %s1364_s21 }
 0x353   : > { %v472_v41 = vpop.permute.xlu1 %471 }
 0x356   : > { %v467_v39 = vpop.permute.xlu0 %466 }
 0x357   : > { %v469_v40 = vadd.f32 %v467_v39, %v450_v36 }
 0x359   : > { %v474_v42 = vadd.f32 %v472_v41, %v469_v40 }
 0x35a   : > { %v477_v43 = vpop.permute.xlu0 %476 }
 0x35b   : > { %v479_v44 = vadd.f32 %v477_v43, %v474_v42  ;;  %v810_v43 = vld [vmem:[%s1682_s6] sm:$0x7] }
 0x35d   : > { %v485_v45 = vrot.slane %v479_v44, 2  ;;  %v481_v46 = vrot.slane %v479_v44, 1  ;;  %v493_v50 = vrot.slane %v479_v44, 4  ;;  %v489_v51 = vrot.slane %v479_v44, 3 }
 0x35e   : > { %v501_v58 = vrot.slane %v479_v44, 6  ;;  %v497_v59 = vrot.slane %v479_v44, 5  ;;  %v505_v62 = vrot.slane %v479_v44, 7 }
 0x35f   : > { %486 = vrot.lane.b32.xlu0 %v485_v45, %s1365_s22  ;;  %482 = vrot.lane.b32.xlu1 %v481_v46, %s1366_s23  ;;  %v814_v45 = vrot.slane %v810_v43, %v766_v29  ;;  %s1371_s22 = smov [#allocation2]  }
 0x360   : > { %s1296_s29 = sshll.u32 %s1371_s22, 4  ;;  %s1297_s29 = int_to_ptr.vmem [resolvable:$false] %s1296_s29 }
 0x363   : > { %494 = vrot.lane.b32.xlu0 %v493_v50, %s1361_s17  ;;  %490 = vrot.lane.b32.xlu1 %v489_v51, %s1367_s20  ;;  %s1628_s20 = scalar_lea.hbm %s1683_s7, %s1125_s14 }
 0x367   : > { %502 = vrot.lane.b32.xlu0 %v501_v58, %s1368_s9  ;;  %498 = vrot.lane.b32.xlu1 %v497_v59, %s1369_s13  ;;  %s269_s9 = sand.u32 1, %s1346_s25  }
 0x368   : > { %s1075_s13 = sshll.u32 %s269_s9, 4  ;;  %s1634_s28 = scalar_lea.sflag [#allocation3], %s269_s9 }
 0x369   : > { %s271_s17 = scalar_lea.vmem [#allocation2], %s1075_s13 }
 0x36a   : > { %s1009_s15 = sshll.u32 %s271_s17, 4  ;;  %s1631_s15 = int_to_ptr.vmem [resolvable:$true] %s1009_s15 }
 0x36b   : > { %506 = vrot.lane.b32.xlu1 %v505_v62, %s1370_s18  ;;  %s1292_s21 = scalar_lea.vmem %s1631_s15, 256  ;;  %p1299_p0 = scmp.lt.s32.totalorder %s1631_s15, %s1297_s29 }
 0x36c   : > { %p1293_p11 = scmp.ne.s32.totalorder %s1631_s15, %s1292_s21 }
 0x36e   : > { %p1294_p12 = pnand %p1293_p11, %p1451_p5 }
 0x370   : > { %p1295_p13 = pneg %p1294_p12 }
 0x371   : > { %v685_v3 = vpop.f32.mrb[8].mxu1 }
 0x372   : > { %v687_v5 = vpop.f32.mrb[9].mxu1 }
 0x373   : > { %v689_v7 = vpop.f32.mrb[10].mxu1 }
 0x374   : > { %v691_v8 = vpop.f32.mrb[11].mxu1 }
 0x3d1   : > { %v487_v9 = vpop.permute.xlu0 %486  ;;  %v483_v10 = vpop.permute.xlu1 %482 }
 0x3d2   : > { %v510_v11 = vsel %vm509_vm9, %v479_v44, %v483_v10 }
 0x3d3   : > { %v511_v15 = vsel %vm409_vm4, %v510_v11, %v487_v9  ;;  %v983_v11 = vsub.s32 1, %v765_v28 }
 0x3d5   : > { %v495_v14 = vpop.permute.xlu0 %494  ;;  %v491_v16 = vpop.permute.xlu1 %490  ;;  %v984_v13 = vrot.slane %v810_v43, %v983_v11 }
 0x3d6   : > { %v513_v18 = vsel %vm512_vm10, %v511_v15, %v491_v16  ;;  %v990_v15 = vrot.slane %v810_v43, %v989_v12 }
 0x3d7   : > { %v514_v20 = vsel %vm310_vm1, %v513_v18, %v495_v14 }
 0x3d9   : > { %v499_v21 = vpop.permute.xlu1 %498  ;;  %v503_v22 = vpop.permute.xlu0 %502 }
 0x3da   : > { %v516_v23 = vsel %vm515_vm11, %v514_v20, %v499_v21 }
 0x3db   : > { %v518_v25 = vsel %vm517_vm12, %v516_v23, %v503_v22 }
 0x3dd   : > { %v507_v24 = vpop.permute.xlu1 %506 }
 0x3de   : > { %v520_v26 = vsel %vm519_vm13, %v518_v25, %v507_v24 }
 0x3df   : > { %522 = vrot.lane.b32.xlu0 %v520_v26, %s1360_s19  ;;  %s1298_s19 = scalar_lea.vmem %s1297_s29, 512 }
 0x3e0   : > { %p1300_p1 = scmp.lt.s32.totalorder %s1298_s19, %s1292_s21 }
 0x3e2   : > { %p1301_p2 = por %p1300_p1, %p1299_p0 }
 0x3e4   : > { %p1302_p3 = pnand %p1301_p2, %p1295_p13 }
 0x451   : > { %v523_v30 = vpop.permute.xlu0 %522 }
 0x452   : > { %v526_v31 = vsel %vm525_vm7, %v520_v26, %v523_v30 }
 0x453   : > { %v767_v32 = vrot.slane %v526_v31, %v766_v29 }
 0x455   : > { %v768_v33 = vadd.f32 %v767_v32, %v685_v3  ;;  %v770_v34 = vadd.f32 %v767_v32, %v689_v7  ;;  %v769_v35 = vadd.f32 %v767_v32, %v687_v5  ;;  %v771_v36 = vadd.f32 %v767_v32, %v691_v8 }
 0x457   : > { %v773_v37 = vmul.f32 %v769_v35, %v1506_v53  ;;  %v775_v38 = vmul.f32 %v771_v36, %v1510_v55  ;;  %v772_v39 = vmul.f32 %v768_v33, %v1504_v52  ;;  %v774_v40 = vmul.f32 %v770_v34, %v1508_v54 }
 0x458   : > { %v280_v53 = vunpack.c.l.bf16 %v1475_v4  ;;  %v281_v54 = vunpack.c.h.bf16 %v1475_v4 }
 0x459   : > { %v777_v41 = vpack.c.bf16 %v775_v38, %v773_v37  ;;  %v776_v42 = vpack.c.bf16 %v774_v40, %v772_v39 }
 0x45b   : > { %943 = vmatprep.mubr.bf16.mxu0 %v777_v41 }
 0x45c   : > { %944 = vmatmul.mubr.bf16.vlgmr.msra.gmra.mrb[4].mxu0 %v776_v42 }
 0x52f   : > { %v1148_v44 = vpop.f32.mrb[4].mxu0 }
 0x530   : > { %v1149_v46 = vpop.f32.mrb[5].mxu0 }
 0x531   : > { %v1150_v47 = vadd.f32 %v1149_v46, %v1148_v44  ;;  %v1151_v48 = vpop.f32.mrb[6].mxu0 }
 0x532   : > { %v1152_v55 = vpop.f32.mrb[7].mxu0 }
 0x533   : > { %v946_v49 = vadd.f32 %v1150_v47, %v814_v45  ;;  %v1153_v52 = vadd.f32 %v1152_v55, %v1151_v48 }
 0x535   : > { %v949_v50 = vadd.f32 %v1153_v52, %v814_v45  ;;  %v952_v51 = vadd.f32 %v946_v49, %v280_v53 }
 0x537   : > { %v954_v56 = vsel %vm310_vm1, %v952_v51, 0.0  ;;  %v953_v57 = vadd.f32 %v949_v50, %v281_v54 }
 0x538   : > { %955 = vadd.xlane.f32.xlu1 %v954_v56 }
 0x539   : > { %v957_v58 = vsel %vm310_vm1, %v953_v57, 0.0 }
 0x53a   : > { %958 = vadd.xlane.f32.xlu0 %v957_v58 }
 0x5c5   : > { %v956_v59 = vpop.xlane.xlu1 %955 }
 0x5c6   : > { %v961_v60 = vmul.f32 0.03125, %v956_v59 }
 0x5c7   : > { %v959_v61 = vpop.xlane.xlu0 %958 }
 0x5c8   : > { %v963_v62 = vsub.f32 %v952_v51, %v961_v60  ;;  %v962_v63 = vmul.f32 0.03125, %v959_v61 }
 0x5ca   : > { %v964_v0 = vsub.f32 %v953_v57, %v962_v63  ;;  %v965_v1 = vmul.f32 %v963_v62, %v963_v62 }
 0x5cc   : > { %v967_v2 = vsel %vm310_vm1, %v965_v1, 0.0  ;;  %v966_v4 = vmul.f32 %v964_v0, %v964_v0 }
 0x5cd   : > { %968 = vadd.xlane.f32.xlu0 %v967_v2 }
 0x5ce   : > { %v970_v3 = vsel %vm310_vm1, %v966_v4, 0.0 }
 0x5cf   : > { %971 = vadd.xlane.f32.xlu1 %v970_v3 }
 0x65a   : > { %v969_v5 = vpop.xlane.xlu0 %968 }
 0x65b   : > { %v973_v6 = vmul.f32 0.03125, %v969_v5 }
 0x65c   : > { %v972_v7 = vpop.xlane.xlu1 %971 }
 0x65d   : > { %v975_v8 = vadd.f32 1e-12, %v973_v6  ;;  %v974_v9 = vmul.f32 0.03125, %v972_v7 }
 0x65f   : > { %1288 = vrsqrt.f32 %v975_v8  ;;  %v976_v10 = vadd.f32 1e-12, %v974_v9 }
 0x661   : > { %1290 = vrsqrt.f32 %v976_v10 }
 0x669   : > { %v1289_v14 = vpop.eup %1288 }
 0x66a   : > { %v979_v16 = vmul.f32 %v1289_v14, %v963_v62 }
 0x66b   : > { %v1291_v17 = vpop.eup %1290 }
 0x66c   : > { %v985_v18 = vmul.f32 %v984_v13, %v979_v16  ;;  %v980_v19 = vmul.f32 %v1291_v17, %v964_v0 }
 0x66e   : > { %v991_v20 = vadd.f32 %v990_v15, %v985_v18  ;;  %v986_v21 = vmul.f32 %v984_v13, %v980_v19 }
 0x670   : > { %v992_v22 = vadd.f32 %v990_v15, %v986_v21  ;;  %993 = vst.msk [vmem:[%s271_s17] sm:$0xff] %vm310_vm1, %v991_v20 }
 0x672   : > { %994 = vst.msk [vmem:[%s271_s17 + $0x8] sm:$0xff] %vm310_vm1, %v992_v22 }
 0x673   : > { %1305 = shalt.err (!%p1302_p3)
}
 0x674   : > { %s1306_s8 = scalar_lea.hbm %s1628_s20, 256  ;;  %s1310_s14 = scalar_lea.hbm %s1683_s7, 512 }
 0x675   : > { %p1307_p4 = scmp.ne.s32.totalorder %s1628_s20, %s1306_s8  ;;  %p1311_p9 = scmp.lt.u32.totalorder %s1628_s20, %s1683_s7 }
 0x676   : > { %p1312_p10 = scmp.lt.u32.totalorder %s1310_s14, %s1306_s8  ;;  %p1314_p12 = scmp.lt.u32.totalorder %s1306_s8, %s1628_s20 }
 0x677   : > { %p1308_p7 = pnand %p1307_p4, %p1451_p5 }
 0x678   : > { %p1313_p11 = por %p1312_p10, %p1311_p9 }
 0x679   : > { %p1309_p8 = pneg %p1308_p7 }
 0x67a   : > { %p1315_p13 = por %p1314_p12, %p1313_p11 }
 0x67c   : > { %p1316_p0 = pnand %p1315_p13, %p1309_p8 }
 0x67e   : > { %1319 = shalt.err (!%p1316_p0)
}
 0x67f   : > { %s1372_s18 = smov 128  }
 0x680   : > { %1168 = dma.vmem_to_hbm [thread:$0]  (%p1451_p5), %s1631_s15, 256, %s1628_s20, %s1634_s28, %s1372_s18, %s1372_s18, %s1366_s23  }
 0x681 PF: > { %p1174_p1 = scmp.ge.s32.totalorder %s1354_s27, 2  ;;  %s1024_s21 = sand.u32 1, %s1342_s24  }
 0x682   : > { %s1025_s22 = scalar_lea.sflag [#allocation3], %s1024_s21 }
 0x683   : > { %p1171_p2 = pnand %p1174_p1, %p1455_p6 }
 0x685   : > { %1337 = dma.done.wait (!%p1171_p2), %s1025_s22, 256  }
 0x686   : > { %1339 = vsyncadd (!%p1171_p2), %s1025_s22, 4294967040  ;;  %p17_p3 = scmp.ge.s32.totalorder %s1438_s30, 4   ;;  %s1686_s24 = smov %s1346_s25 }
 0x687   : > { %s1687_s25 = smov %s1350_s26  ;;  %s1688_s26 = smov %s1449_s10 }
 0x688   : > { %s1689_s27 = smov %s1438_s30  ;;  %19 = sbr.rel (!%p17_p3) target bundleno = 3 (0x3), region = 83 }
 0x68f   :  { %1030 = vsyncpa [#allocation3], 1 }
 0x690   :  { %1032 = vsyncpa [#allocation3 + $0x1], 1 }

</bundles_post_ra>
